<compile_context>
chip_gen: v7x
topology: tpu7x:2x2x1
jax: 0.10.0
libtpu: 0.0.40
codegen_flags: <defaults>
</compile_context>

<pallas_src>
import jax
import jax.numpy as jnp
from jax.experimental import pallas as pl
from jax.experimental.pallas import tpu as pltpu

# Problem sizes (whole residual block fits easily in VMEM -> fully fused kernel).
N, H, W = 2, 16, 16
IN_CH, OUT_CH, KSIZE = 4, 8, 3
PAD = KSIZE // 2
HW = H * W                     # flattened spatial extent per image (lane dim)
NTAPS = KSIZE * KSIZE          # 9
MAXOFF = PAD * W + PAD         # largest |flat-index shift| of any tap (17)


def residual_block_kernel(x_ref, mask_ref, w1_ref, b1_ref, w2_ref, b2_ref,
                          w3_ref, b3_ref, w4_ref, b4_ref, o_ref, pad_ref):
    """One grid step == one image. Channels on sublanes, flat spatial on lanes."""
    x = x_ref[0]                       # (IN_CH, HW) f32
    mask = mask_ref[...]               # (NTAPS*OUT_CH, HW) 0/1 border mask

    # Zero only the halo of the padded scratch once per image; the interior is
    # fully overwritten by every conv3x3 call below (no full-buffer re-zeroing).
    zeros_halo = jnp.zeros((OUT_CH, MAXOFF), jnp.float32)
    pad_ref[:, :MAXOFF] = zeros_halo
    pad_ref[:, MAXOFF + HW:] = zeros_halo

    # --- ConvBlock 1: 1x1 conv (IN_CH -> OUT_CH) + ReLU ----------------------
    h = jnp.dot(w1_ref[...], x, preferred_element_type=jnp.float32)
    h = jnp.maximum(h + b1_ref[...], 0.0)           # (OUT_CH, HW)

    # --- 3x3 'same' conv + ReLU as a single im2col matmul --------------------
    def conv3x3_relu(act, w_mat, b_col):
        # act: (OUT_CH, HW). Write it into the interior of the halo scratch,
        # then read 9 statically shifted lane-dense windows.
        pad_ref[:, MAXOFF:MAXOFF + HW] = act
        taps = []
        for kh in range(KSIZE):
            for kw in range(KSIZE):
                off = (kh - PAD) * W + (kw - PAD)
                taps.append(pad_ref[:, MAXOFF + off:MAXOFF + off + HW])
        # (NTAPS*OUT_CH, HW); the mask zeroes positions whose shift crossed a
        # row / image boundary so the result matches zero 'same' padding.
        im2col = jnp.concatenate(taps, axis=0) * mask
        y = jnp.dot(w_mat, im2col, preferred_element_type=jnp.float32)
        return jnp.maximum(y + b_col, 0.0)          # (OUT_CH, HW)

    # --- ConvBlock 2 & 3: 3x3 conv (OUT_CH -> OUT_CH) + ReLU -----------------
    h = conv3x3_relu(h, w2_ref[...], b2_ref[...])
    h = conv3x3_relu(h, w3_ref[...], b3_ref[...])

    # --- ConvBlock 4: 1x1 conv (OUT_CH -> IN_CH) + ReLU ----------------------
    h = jnp.dot(w4_ref[...], h, preferred_element_type=jnp.float32)
    h = jnp.maximum(h + b4_ref[...], 0.0)           # (IN_CH, HW)

    # --- residual add, lane-dense store --------------------------------------
    o_ref[0] = (h + x).astype(o_ref.dtype)


def residual_block(x_nchw, params):
    """x_nchw: (N, IN_CH, H, W) f32. Returns NCHW output."""
    n = x_nchw.shape[0]
    x_flat = x_nchw.reshape(n, IN_CH, HW)     # NCHW already == channels-on-sublanes
    rep = lambda b: (0, 0)                    # weights / mask: same block each step
    out_flat = pl.pallas_call(
        residual_block_kernel,
        out_shape=jax.ShapeDtypeStruct((n, IN_CH, HW), jnp.float32),
        grid=(n,),
        in_specs=[
            pl.BlockSpec((1, IN_CH, HW), lambda b: (b, 0, 0)),   # x
            pl.BlockSpec((NTAPS * OUT_CH, HW), rep),             # border mask
            pl.BlockSpec((OUT_CH, IN_CH), rep),                  # w1
            pl.BlockSpec((OUT_CH, 1), rep),                      # b1
            pl.BlockSpec((OUT_CH, NTAPS * OUT_CH), rep),         # w2 (im2col)
            pl.BlockSpec((OUT_CH, 1), rep),                      # b2
            pl.BlockSpec((OUT_CH, NTAPS * OUT_CH), rep),         # w3 (im2col)
            pl.BlockSpec((OUT_CH, 1), rep),                      # b3
            pl.BlockSpec((IN_CH, OUT_CH), rep),                  # w4
            pl.BlockSpec((IN_CH, 1), rep),                       # b4
        ],
        out_specs=pl.BlockSpec((1, IN_CH, HW), lambda b: (b, 0, 0)),
        scratch_shapes=[
            pltpu.VMEM((OUT_CH, HW + 2 * MAXOFF), jnp.float32),  # halo scratch
        ],
        compiler_params=pltpu.CompilerParams(
            dimension_semantics=("parallel",)),                  # v7x: 2 TCs
    )(x_flat, params["mask"], params["w1"], params["b1"],
      params["w2"], params["b2"], params["w3"], params["b3"],
      params["w4"], params["b4"])
    return out_flat.reshape(n, IN_CH, H, W)


# ----------------------------- plain-JAX glue --------------------------------
def build_tap_masks():
    """(NTAPS*OUT_CH, HW) 0/1 mask: validity of each tap at each flat position."""
    h_idx = jnp.arange(HW, dtype=jnp.int32) // W
    w_idx = jnp.arange(HW, dtype=jnp.int32) % W
    rows = []
    for kh in range(KSIZE):
        for kw in range(KSIZE):
            dh, dw = kh - PAD, kw - PAD
            valid = ((h_idx + dh >= 0) & (h_idx + dh < H) &
                     (w_idx + dw >= 0) & (w_idx + dw < W)).astype(jnp.float32)
            rows.append(jnp.broadcast_to(valid[None, :], (OUT_CH, HW)))
    return jnp.concatenate(rows, axis=0)


def init_params(key):
    """Deterministic synthetic parameters (shapes mirror the PyTorch module)."""
    ks = jax.random.split(key, 8)
    s = 0.1
    w1 = s * jax.random.normal(ks[0], (OUT_CH, IN_CH, 1, 1), jnp.float32)
    w2 = s * jax.random.normal(ks[1], (OUT_CH, OUT_CH, KSIZE, KSIZE), jnp.float32)
    w3 = s * jax.random.normal(ks[2], (OUT_CH, OUT_CH, KSIZE, KSIZE), jnp.float32)
    w4 = s * jax.random.normal(ks[3], (IN_CH, OUT_CH, 1, 1), jnp.float32)
    b1 = s * jax.random.normal(ks[4], (OUT_CH,), jnp.float32)
    b2 = s * jax.random.normal(ks[5], (OUT_CH,), jnp.float32)
    b3 = s * jax.random.normal(ks[6], (OUT_CH,), jnp.float32)
    b4 = s * jax.random.normal(ks[7], (IN_CH,), jnp.float32)
    params = {
        # 1x1 convs become (Cout, Cin) matmul weights (lane-dense activations)
        "w1": w1[:, :, 0, 0],                                        # (8, 4)
        "w4": w4[:, :, 0, 0],                                        # (4, 8)
        # 3x3 convs: OIHW -> (Cout, kh*kw*Cin) im2col weights, K = 72
        "w2": jnp.transpose(w2, (0, 2, 3, 1)).reshape(OUT_CH, -1),   # (8, 72)
        "w3": jnp.transpose(w3, (0, 2, 3, 1)).reshape(OUT_CH, -1),   # (8, 72)
        # biases as (C, 1) columns: broadcast along the lane (spatial) dim
        "b1": b1[:, None], "b2": b2[:, None],
        "b3": b3[:, None], "b4": b4[:, None],
        "mask": build_tap_masks(),
    }
    oihw = {"w1": w1, "w2": w2, "w3": w3, "w4": w4,
            "b1": b1, "b2": b2, "b3": b3, "b4": b4}
    return params, oihw


def reference_forward(x_nchw, oihw):
    """Pure-JAX reference matching the PyTorch forward (NCHW semantics)."""
    def conv_relu(x, w_oihw, b, pad):
        y = jax.lax.conv_general_dilated(
            x, w_oihw, window_strides=(1, 1),
            padding=[(pad, pad), (pad, pad)],
            dimension_numbers=("NCHW", "OIHW", "NCHW"))
        return jnp.maximum(y + b[None, :, None, None], 0.0)

    h = conv_relu(x_nchw, oihw["w1"], oihw["b1"], 0)
    h = conv_relu(h, oihw["w2"], oihw["b2"], PAD)
    h = conv_relu(h, oihw["w3"], oihw["b3"], PAD)
    h = conv_relu(h, oihw["w4"], oihw["b4"], 0)
    return h + x_nchw


if __name__ == "__main__":
    key = jax.random.PRNGKey(0)
    k_x, k_p = jax.random.split(key)
    # PyTorch input is NCHW (2, 4, 16, 16); the kernel consumes it directly
    # (flattening H*W onto lanes is a pure reshape).
    x_nchw = jax.random.normal(k_x, (N, IN_CH, H, W), jnp.float32)

    params, oihw = init_params(k_p)

    out = residual_block(x_nchw, params)
    out = jax.block_until_ready(out)

    ref = reference_forward(x_nchw, oihw)
    assert out.shape == (N, IN_CH, H, W)
    assert jnp.allclose(out, ref, atol=1e-4, rtol=1e-4), "mismatch vs JAX reference"

    print("KERNEL_OK")
</pallas_src>

<mosaic_0001>
module attributes {stable_mosaic.version = 11 : i64} {
  func.func @residual_block_kernel(%arg0: i32, %arg1: memref<1x4x256xf32, #tpu.memory_space<vmem>>, %arg2: memref<72x256xf32, #tpu.memory_space<vmem>>, %arg3: memref<8x4xf32, #tpu.memory_space<vmem>>, %arg4: memref<8x1xf32, #tpu.memory_space<vmem>>, %arg5: memref<8x72xf32, #tpu.memory_space<vmem>>, %arg6: memref<8x1xf32, #tpu.memory_space<vmem>>, %arg7: memref<8x72xf32, #tpu.memory_space<vmem>>, %arg8: memref<8x1xf32, #tpu.memory_space<vmem>>, %arg9: memref<4x8xf32, #tpu.memory_space<vmem>>, %arg10: memref<4x1xf32, #tpu.memory_space<vmem>>, %arg11: memref<1x4x256xf32, #tpu.memory_space<vmem>>, %arg12: memref<8x290xf32, #tpu.memory_space<vmem>>) attributes {dimension_semantics = [#tpu.dimension_semantics<parallel>], iteration_bounds = array<i64: 2>, scalar_prefetch = 0 : i64, scratch_operands = 1 : i64, tpu.core_type = #tpu.core_type<tc>, window_params = [{transform_indices = @transform_0, window_bounds = array<i64: 1, 4, 256>}, {pipeline_mode = #tpu.pipeline_mode<synchronous>, transform_indices = @transform_1, window_bounds = array<i64: 72, 256>}, {pipeline_mode = #tpu.pipeline_mode<synchronous>, transform_indices = @transform_2, window_bounds = array<i64: 8, 4>}, {pipeline_mode = #tpu.pipeline_mode<synchronous>, transform_indices = @transform_3, window_bounds = array<i64: 8, 1>}, {pipeline_mode = #tpu.pipeline_mode<synchronous>, transform_indices = @transform_4, window_bounds = array<i64: 8, 72>}, {pipeline_mode = #tpu.pipeline_mode<synchronous>, transform_indices = @transform_5, window_bounds = array<i64: 8, 1>}, {pipeline_mode = #tpu.pipeline_mode<synchronous>, transform_indices = @transform_6, window_bounds = array<i64: 8, 72>}, {pipeline_mode = #tpu.pipeline_mode<synchronous>, transform_indices = @transform_7, window_bounds = array<i64: 8, 1>}, {pipeline_mode = #tpu.pipeline_mode<synchronous>, transform_indices = @transform_8, window_bounds = array<i64: 4, 8>}, {pipeline_mode = #tpu.pipeline_mode<synchronous>, transform_indices = @transform_9, window_bounds = array<i64: 4, 1>}, {transform_indices = @transform_10, window_bounds = array<i64: 1, 4, 256>}]} {
    %c0 = arith.constant 0 : index
    %c0_0 = arith.constant 0 : index
    %c0_1 = arith.constant 0 : index
    %0 = vector.load %arg1[%c0, %c0_0, %c0_1] : memref<1x4x256xf32, #tpu.memory_space<vmem>>, vector<1x4x256xf32>
    %1 = vector.shape_cast %0 : vector<1x4x256xf32> to vector<4x256xf32>
    %c0_2 = arith.constant 0 : index
    %c0_3 = arith.constant 0 : index
    %2 = vector.load %arg2[%c0_2, %c0_3] : memref<72x256xf32, #tpu.memory_space<vmem>>, vector<72x256xf32>
    %cst = arith.constant 0.000000e+00 : f32
    %3 = vector.broadcast %cst : f32 to vector<8x17xf32>
    %c0_4 = arith.constant 0 : index
    %c0_5 = arith.constant 0 : index
    %4 = vector.load %arg12[%c0_4, %c0_5] : memref<8x290xf32, #tpu.memory_space<vmem>>, vector<8x17xf32>
    tpu.vector_store %arg12[%c0_4, %c0_5], %3 {strides = array<i32>} : memref<8x290xf32, #tpu.memory_space<vmem>>, vector<8x17xf32>,
    %c0_6 = arith.constant 0 : index
    %c273 = arith.constant 273 : index
    %5 = vector.load %arg12[%c0_6, %c273] : memref<8x290xf32, #tpu.memory_space<vmem>>, vector<8x17xf32>
    tpu.vector_store %arg12[%c0_6, %c273], %3 {strides = array<i32>} : memref<8x290xf32, #tpu.memory_space<vmem>>, vector<8x17xf32>,
    %c0_7 = arith.constant 0 : index
    %c0_8 = arith.constant 0 : index
    %6 = vector.load %arg3[%c0_7, %c0_8] : memref<8x4xf32, #tpu.memory_space<vmem>>, vector<8x4xf32>
    %cst_9 = arith.constant dense<0.000000e+00> : vector<8x256xf32>
    %7 = tpu.matmul %6, %1, %cst_9 {dimension_numbers = #tpu.dot_dimension_numbers<[1], [0], [0], [1], [0, 0, 1, 1], [], []>} : vector<8x4xf32>, vector<4x256xf32>, vector<8x256xf32> -> vector<8x256xf32>
    %c0_10 = arith.constant 0 : index
    %c0_11 = arith.constant 0 : index
    %8 = vector.load %arg4[%c0_10, %c0_11] : memref<8x1xf32, #tpu.memory_space<vmem>>, vector<8x1xf32>
    %9 = vector.broadcast %8 : vector<8x1xf32> to vector<8x256xf32>
    %10 = arith.addf %7, %9 : vector<8x256xf32>
    %cst_12 = arith.constant 0.000000e+00 : f32
    %11 = vector.broadcast %cst_12 : f32 to vector<8x256xf32>
    %12 = arith.maximumf %10, %11 : vector<8x256xf32>
    %c0_13 = arith.constant 0 : index
    %c0_14 = arith.constant 0 : index
    %13 = vector.load %arg5[%c0_13, %c0_14] : memref<8x72xf32, #tpu.memory_space<vmem>>, vector<8x72xf32>
    %c0_15 = arith.constant 0 : index
    %c0_16 = arith.constant 0 : index
    %14 = vector.load %arg6[%c0_15, %c0_16] : memref<8x1xf32, #tpu.memory_space<vmem>>, vector<8x1xf32>
    %c0_17 = arith.constant 0 : index
    %c17 = arith.constant 17 : index
    %15 = vector.load %arg12[%c0_17, %c17] : memref<8x290xf32, #tpu.memory_space<vmem>>, vector<8x256xf32>
    tpu.vector_store %arg12[%c0_17, %c17], %12 {strides = array<i32>} : memref<8x290xf32, #tpu.memory_space<vmem>>, vector<8x256xf32>,
    %c0_18 = arith.constant 0 : index
    %c0_19 = arith.constant 0 : index
    %16 = vector.load %arg12[%c0_18, %c0_19] : memref<8x290xf32, #tpu.memory_space<vmem>>, vector<8x256xf32>
    %c0_20 = arith.constant 0 : index
    %c1 = arith.constant 1 : index
    %17 = vector.load %arg12[%c0_20, %c1] : memref<8x290xf32, #tpu.memory_space<vmem>>, vector<8x256xf32>
    %c0_21 = arith.constant 0 : index
    %c2 = arith.constant 2 : index
    %18 = vector.load %arg12[%c0_21, %c2] : memref<8x290xf32, #tpu.memory_space<vmem>>, vector<8x256xf32>
    %c0_22 = arith.constant 0 : index
    %c16 = arith.constant 16 : index
    %19 = vector.load %arg12[%c0_22, %c16] : memref<8x290xf32, #tpu.memory_space<vmem>>, vector<8x256xf32>
    %c0_23 = arith.constant 0 : index
    %c17_24 = arith.constant 17 : index
    %20 = vector.load %arg12[%c0_23, %c17_24] : memref<8x290xf32, #tpu.memory_space<vmem>>, vector<8x256xf32>
    %c0_25 = arith.constant 0 : index
    %c18 = arith.constant 18 : index
    %21 = vector.load %arg12[%c0_25, %c18] : memref<8x290xf32, #tpu.memory_space<vmem>>, vector<8x256xf32>
    %c0_26 = arith.constant 0 : index
    %c32 = arith.constant 32 : index
    %22 = vector.load %arg12[%c0_26, %c32] : memref<8x290xf32, #tpu.memory_space<vmem>>, vector<8x256xf32>
    %c0_27 = arith.constant 0 : index
    %c33 = arith.constant 33 : index
    %23 = vector.load %arg12[%c0_27, %c33] : memref<8x290xf32, #tpu.memory_space<vmem>>, vector<8x256xf32>
    %c0_28 = arith.constant 0 : index
    %c34 = arith.constant 34 : index
    %24 = vector.load %arg12[%c0_28, %c34] : memref<8x290xf32, #tpu.memory_space<vmem>>, vector<8x256xf32>
    %25 = tpu.concatenate %16, %17, %18, %19, %20, %21, %22, %23, %24 in 0 : vector<8x256xf32>, vector<8x256xf32>, vector<8x256xf32>, vector<8x256xf32>, vector<8x256xf32>, vector<8x256xf32>, vector<8x256xf32>, vector<8x256xf32>, vector<8x256xf32> -> vector<72x256xf32>
    %26 = arith.mulf %25, %2 : vector<72x256xf32>
    %cst_29 = arith.constant dense<0.000000e+00> : vector<8x256xf32>
    %27 = tpu.matmul %13, %26, %cst_29 {dimension_numbers = #tpu.dot_dimension_numbers<[1], [0], [0], [1], [0, 0, 1, 1], [], []>} : vector<8x72xf32>, vector<72x256xf32>, vector<8x256xf32> -> vector<8x256xf32>
    %28 = vector.broadcast %14 : vector<8x1xf32> to vector<8x256xf32>
    %29 = arith.addf %27, %28 : vector<8x256xf32>
    %cst_30 = arith.constant 0.000000e+00 : f32
    %30 = vector.broadcast %cst_30 : f32 to vector<8x256xf32>
    %31 = arith.maximumf %29, %30 : vector<8x256xf32>
    %c0_31 = arith.constant 0 : index
    %c0_32 = arith.constant 0 : index
    %32 = vector.load %arg7[%c0_31, %c0_32] : memref<8x72xf32, #tpu.memory_space<vmem>>, vector<8x72xf32>
    %c0_33 = arith.constant 0 : index
    %c0_34 = arith.constant 0 : index
    %33 = vector.load %arg8[%c0_33, %c0_34] : memref<8x1xf32, #tpu.memory_space<vmem>>, vector<8x1xf32>
    %c0_35 = arith.constant 0 : index
    %c17_36 = arith.constant 17 : index
    %34 = vector.load %arg12[%c0_35, %c17_36] : memref<8x290xf32, #tpu.memory_space<vmem>>, vector<8x256xf32>
    tpu.vector_store %arg12[%c0_35, %c17_36], %31 {strides = array<i32>} : memref<8x290xf32, #tpu.memory_space<vmem>>, vector<8x256xf32>,
    %c0_37 = arith.constant 0 : index
    %c0_38 = arith.constant 0 : index
    %35 = vector.load %arg12[%c0_37, %c0_38] : memref<8x290xf32, #tpu.memory_space<vmem>>, vector<8x256xf32>
    %c0_39 = arith.constant 0 : index
    %c1_40 = arith.constant 1 : index
    %36 = vector.load %arg12[%c0_39, %c1_40] : memref<8x290xf32, #tpu.memory_space<vmem>>, vector<8x256xf32>
    %c0_41 = arith.constant 0 : index
    %c2_42 = arith.constant 2 : index
    %37 = vector.load %arg12[%c0_41, %c2_42] : memref<8x290xf32, #tpu.memory_space<vmem>>, vector<8x256xf32>
    %c0_43 = arith.constant 0 : index
    %c16_44 = arith.constant 16 : index
    %38 = vector.load %arg12[%c0_43, %c16_44] : memref<8x290xf32, #tpu.memory_space<vmem>>, vector<8x256xf32>
    %c0_45 = arith.constant 0 : index
    %c17_46 = arith.constant 17 : index
    %39 = vector.load %arg12[%c0_45, %c17_46] : memref<8x290xf32, #tpu.memory_space<vmem>>, vector<8x256xf32>
    %c0_47 = arith.constant 0 : index
    %c18_48 = arith.constant 18 : index
    %40 = vector.load %arg12[%c0_47, %c18_48] : memref<8x290xf32, #tpu.memory_space<vmem>>, vector<8x256xf32>
    %c0_49 = arith.constant 0 : index
    %c32_50 = arith.constant 32 : index
    %41 = vector.load %arg12[%c0_49, %c32_50] : memref<8x290xf32, #tpu.memory_space<vmem>>, vector<8x256xf32>
    %c0_51 = arith.constant 0 : index
    %c33_52 = arith.constant 33 : index
    %42 = vector.load %arg12[%c0_51, %c33_52] : memref<8x290xf32, #tpu.memory_space<vmem>>, vector<8x256xf32>
    %c0_53 = arith.constant 0 : index
    %c34_54 = arith.constant 34 : index
    %43 = vector.load %arg12[%c0_53, %c34_54] : memref<8x290xf32, #tpu.memory_space<vmem>>, vector<8x256xf32>
    %44 = tpu.concatenate %35, %36, %37, %38, %39, %40, %41, %42, %43 in 0 : vector<8x256xf32>, vector<8x256xf32>, vector<8x256xf32>, vector<8x256xf32>, vector<8x256xf32>, vector<8x256xf32>, vector<8x256xf32>, vector<8x256xf32>, vector<8x256xf32> -> vector<72x256xf32>
    %45 = arith.mulf %44, %2 : vector<72x256xf32>
    %cst_55 = arith.constant dense<0.000000e+00> : vector<8x256xf32>
    %46 = tpu.matmul %32, %45, %cst_55 {dimension_numbers = #tpu.dot_dimension_numbers<[1], [0], [0], [1], [0, 0, 1, 1], [], []>} : vector<8x72xf32>, vector<72x256xf32>, vector<8x256xf32> -> vector<8x256xf32>
    %47 = vector.broadcast %33 : vector<8x1xf32> to vector<8x256xf32>
    %48 = arith.addf %46, %47 : vector<8x256xf32>
    %cst_56 = arith.constant 0.000000e+00 : f32
    %49 = vector.broadcast %cst_56 : f32 to vector<8x256xf32>
    %50 = arith.maximumf %48, %49 : vector<8x256xf32>
    %c0_57 = arith.constant 0 : index
    %c0_58 = arith.constant 0 : index
    %51 = vector.load %arg9[%c0_57, %c0_58] : memref<4x8xf32, #tpu.memory_space<vmem>>, vector<4x8xf32>
    %cst_59 = arith.constant dense<0.000000e+00> : vector<4x256xf32>
    %52 = tpu.matmul %51, %50, %cst_59 {dimension_numbers = #tpu.dot_dimension_numbers<[1], [0], [0], [1], [0, 0, 1, 1], [], []>} : vector<4x8xf32>, vector<8x256xf32>, vector<4x256xf32> -> vector<4x256xf32>
    %c0_60 = arith.constant 0 : index
    %c0_61 = arith.constant 0 : index
    %53 = vector.load %arg10[%c0_60, %c0_61] : memref<4x1xf32, #tpu.memory_space<vmem>>, vector<4x1xf32>
    %54 = vector.broadcast %53 : vector<4x1xf32> to vector<4x256xf32>
    %55 = arith.addf %52, %54 : vector<4x256xf32>
    %cst_62 = arith.constant 0.000000e+00 : f32
    %56 = vector.broadcast %cst_62 : f32 to vector<4x256xf32>
    %57 = arith.maximumf %55, %56 : vector<4x256xf32>
    %58 = arith.addf %57, %1 : vector<4x256xf32>
    %c0_63 = arith.constant 0 : index
    %c0_64 = arith.constant 0 : index
    %c0_65 = arith.constant 0 : index
    %59 = vector.load %arg11[%c0_63, %c0_64, %c0_65] : memref<1x4x256xf32, #tpu.memory_space<vmem>>, vector<1x4x256xf32>
    %60 = vector.shape_cast %59 : vector<1x4x256xf32> to vector<4x256xf32>
    %61 = vector.shape_cast %58 : vector<4x256xf32> to vector<1x4x256xf32>
    tpu.vector_store %arg11[%c0_63, %c0_64, %c0_65], %61 {strides = array<i32>} : memref<1x4x256xf32, #tpu.memory_space<vmem>>, vector<1x4x256xf32>,
    return
  }
  func.func @transform_0(%arg0: i32) -> (i32, i32, i32) {
    %c0_i32 = arith.constant 0 : i32
    %c0_i32_0 = arith.constant 0 : i32
    %c0_i32_1 = arith.constant 0 : i32
    return %arg0, %c0_i32, %c0_i32_0 : i32, i32, i32
  }
  func.func @transform_1(%arg0: i32) -> (i32, i32) {
    %c0_i32 = arith.constant 0 : i32
    %c0_i32_0 = arith.constant 0 : i32
    %c0_i32_1 = arith.constant 0 : i32
    return %c0_i32, %c0_i32_0 : i32, i32
  }
  func.func @transform_2(%arg0: i32) -> (i32, i32) {
    %c0_i32 = arith.constant 0 : i32
    %c0_i32_0 = arith.constant 0 : i32
    %c0_i32_1 = arith.constant 0 : i32
    return %c0_i32, %c0_i32_0 : i32, i32
  }
  func.func @transform_3(%arg0: i32) -> (i32, i32) {
    %c0_i32 = arith.constant 0 : i32
    %c0_i32_0 = arith.constant 0 : i32
    %c0_i32_1 = arith.constant 0 : i32
    return %c0_i32, %c0_i32_0 : i32, i32
  }
  func.func @transform_4(%arg0: i32) -> (i32, i32) {
    %c0_i32 = arith.constant 0 : i32
    %c0_i32_0 = arith.constant 0 : i32
    %c0_i32_1 = arith.constant 0 : i32
    return %c0_i32, %c0_i32_0 : i32, i32
  }
  func.func @transform_5(%arg0: i32) -> (i32, i32) {
    %c0_i32 = arith.constant 0 : i32
    %c0_i32_0 = arith.constant 0 : i32
    %c0_i32_1 = arith.constant 0 : i32
    return %c0_i32, %c0_i32_0 : i32, i32
  }
  func.func @transform_6(%arg0: i32) -> (i32, i32) {
    %c0_i32 = arith.constant 0 : i32
    %c0_i32_0 = arith.constant 0 : i32
    %c0_i32_1 = arith.constant 0 : i32
    return %c0_i32, %c0_i32_0 : i32, i32
  }
  func.func @transform_7(%arg0: i32) -> (i32, i32) {
    %c0_i32 = arith.constant 0 : i32
    %c0_i32_0 = arith.constant 0 : i32
    %c0_i32_1 = arith.constant 0 : i32
    return %c0_i32, %c0_i32_0 : i32, i32
  }
  func.func @transform_8(%arg0: i32) -> (i32, i32) {
    %c0_i32 = arith.constant 0 : i32
    %c0_i32_0 = arith.constant 0 : i32
    %c0_i32_1 = arith.constant 0 : i32
    return %c0_i32, %c0_i32_0 : i32, i32
  }
  func.func @transform_9(%arg0: i32) -> (i32, i32) {
    %c0_i32 = arith.constant 0 : i32
    %c0_i32_0 = arith.constant 0 : i32
    %c0_i32_1 = arith.constant 0 : i32
    return %c0_i32, %c0_i32_0 : i32, i32
  }
  func.func @transform_10(%arg0: i32) -> (i32, i32, i32) {
    %c0_i32 = arith.constant 0 : i32
    %c0_i32_0 = arith.constant 0 : i32
    %c0_i32_1 = arith.constant 0 : i32
    return %arg0, %c0_i32, %c0_i32_0 : i32, i32, i32
  }
}

</mosaic_0001>

<bundles_post_ra>
// kernel: tpu_custom_call.1
= control target key start
LH: loop header
LB: loop body
LE: loop exit
PB: predicated region body
PF: predicated region fallthrough
CT: control target
= control target key end

     0   :  { %15 = vsyncpa [#allocation4], 0  ;;  %s1704_s0 = inlined_call_operand.vmem [shape: f32[2,4,256], index: 0, kind: input, shape index: {}]   ;;  %s1705_s1 = inlined_call_operand.hbm [shape: f32[72,256], index: 1, kind: input, shape index: {}]   ;;  %s1706_s2 = inlined_call_operand.vmem [shape: f32[8,4], index: 2, kind: input, shape index: {}]   ;;  %s1707_s3 = inlined_call_operand.vmem [shape: f32[8,1], index: 3, kind: input, shape index: {}]   ;;  %s1708_s4 = inlined_call_operand.vmem [shape: f32[8,72], index: 4, kind: input, shape index: {}]   ;;  %s1709_s5 = inlined_call_operand.vmem [shape: f32[8,1], index: 5, kind: input, shape index: {}]   ;;  %s1710_s6 = inlined_call_operand.vmem [shape: f32[8,72], index: 6, kind: input, shape index: {}]   ;;  %s1711_s7 = inlined_call_operand.vmem [shape: f32[8,1], index: 7, kind: input, shape index: {}]   ;;  %s1712_s8 = inlined_call_operand.vmem [shape: f32[4,8], index: 8, kind: input, shape index: {}]   ;;  %s1713_s9 = inlined_call_operand.vmem [shape: f32[4,1], index: 9, kind: input, shape index: {}]   ;;  %s1714_s10 = inlined_call_operand.hbm [shape: f32[2,4,256], index: 10, kind: output, shape index: {}]  }
   0x1   :  { %16 = vsyncpa [#allocation5], 0 }
   0x2   :  { %18 = vsyncpa [#allocation5 + $0x1], 0  ;;  %s1361_s13 = smov 0   ;;  %s1363_s14 = smov 0  }
   0x3   :  { %s1365_s15 = smov 0   ;;  %s1367_s16 = smov 0  }
   0x4 LB: > { %s1382_s17 = sadd.s32 4294967295, %s1289_s16   ;;  %s1075_s18 = sadd.s32 4294967294, %s1289_s16   ;;  %s1289_s16 = sphi %s1367_s16, %s1730_s16   ;;  %s1285_s15 = sphi %s1365_s15, %s1729_s15   ;;  %s1281_s14 = sphi %s1363_s14, %s1728_s14   ;;  %s1277_s13 = sphi %s1361_s13, %s1727_s13  }
   0x5   : > { %s1386_s19 = sadd.s32 1, %s1289_s16   ;;  %s246_s20 = sadd.s32 1, %s1285_s15 }
   0x6   : > { %s243_s21 = ssub.s32 %s1289_s16, %s1386_s19  ;;  %p256_p0 = scmp.ne.s32.totalorder %s1285_s15, %s1281_s14 }
   0x7   : > { %p244_p1 = scmp.eq.s32.totalorder %s243_s21, 0  ;;  %p257_p2 = scmp.eq.s32.totalorder %s1382_s17, 1 }
   0x8   : > { %p262_p3 = scmp.ne.s32.totalorder %s1281_s14, %s1277_s13  ;;  %p263_p4 = scmp.eq.s32.totalorder %s1075_s18, 1 }
   0x9   : > { %s1397_s22 = scalar_select %p244_p1, %s1285_s15, %s246_s20  }
   0xa   : > { %p1399_p5 = por %p257_p2, %p256_p0  ;;  %p1403_p6 = por %p263_p4, %p262_p3 }
   0xb   : > { %p1076_p7 = scmp.ge.s32.totalorder %s1289_s16, 1  ;;  %p270_p8 = scmp.lt.s32.totalorder %s1289_s16, 3 }
   0xc   : > { %s1718_s23 = scalar_select %p1399_p5, 1, 0 }
   0xd   : > { %s1719_s24 = scalar_select %p1403_p6, 1, 0 }
   0xe   : > { %p1715_p9 = scmp.eq.s32.totalorder %s1382_s17, 0  ;;  %p1410_p10 = pnand %p1076_p7, %p270_p8 }
   0xf   : > { %s1291_s26 = smov [#allocation3]   ;;  %s1195_s11 = scalar_lea.hbm %s1705_s1, 2304 }
  0x10   : > { %s1720_s25 = scalar_select %p1410_p10, 1, 0 }
  0x11   : > { %s282_s27 = sshll.u32 %s1291_s26, 4  ;;  %p1135_p11 = pneg %p1410_p10  ;;  %s283_s27 = int_to_ptr.vmem [resolvable:$true] %s282_s27 }
  0x12   : > { %p1196_p13 = scmp.ne.s32.totalorder %s1705_s1, %s1195_s11  ;;  %p1202_p3 = scmp.lt.u32.totalorder %s1195_s11, %s1705_s1 }
  0x13   : > { %p1418_p12 = pnand %p1715_p9, %p1135_p11 }
  0x15   : > { %p1197_p0 = pneg %p1418_p12 }
  0x17   : > { %p1198_p1 = pnand %p1197_p0, %p1196_p13 }
  0x19   : > { %p1199_p2 = pneg %p1198_p1 }
  0x1b   : > { %p1204_p4 = pnand %p1202_p3, %p1199_p2 }
  0x1d   : > { %1207 = shalt.err (!%p1204_p4)
}
  0x1e   : > { %s1208_s26 = scalar_lea.vmem %s283_s27, 2304  ;;  %p1216_p9 = scmp.lt.s32.totalorder %s283_s27, %s283_s27 }
  0x1f   : > { %p1209_p7 = scmp.ne.s32.totalorder %s283_s27, %s1208_s26  ;;  %p1217_p6 = scmp.lt.s32.totalorder %s1208_s26, %s1208_s26 }
  0x21   : > { %p1211_p8 = pnand %p1209_p7, %p1197_p0  ;;  %p1218_p5 = por %p1217_p6, %p1216_p9 }
  0x23   : > { %p1212_p11 = pneg %p1211_p8 }
  0x25   : > { %p1219_p10 = pnand %p1218_p5, %p1212_p11 }
  0x27   : > { %1222 = shalt.err (!%p1219_p10)
}
  0x28   : > { %s1292_s29 = smov 256   ;;  %s1293_s30 = smov 16  }
  0x29   : > { %1138 = dma.hbm_to_vmem [thread:$0]  (!%p1418_p12), %s1705_s1, 2304, %s283_s27, [#allocation4], %s1292_s29, %s1292_s29, %s1293_s30  }
  0x2a   : > { %p1722_p13 = scmp.ne.s32.totalorder %s1720_s25, 0 }
  0x2b   : > { %p1723_p1 = scmp.eq.s32.totalorder (!%p1722_p13), %s1382_s17, 0 }
  0x2c   : > { %330 = sbr.rel (%p1722_p13) target bundleno = 1525 (0x5f5), region = 60 }
  0x33   : > { %1268 = dma.done.wait (%p1723_p1), [#allocation4], 2304   ;;  %p1724_p0 = pmov %p1723_p1 }
  0x34   : > { %p368_p5 = scmp.lt.s32.totalorder %s1382_s17, 1  ;;  %v1294_v0 = vmov 0.0   ;;  %v1295_v1 = vmov 0   ;;  %vm409_vm0 = vcmask 1043456   ;;  %v397_v3 = vld [vmem:[%s1707_s3] sm:$0xff]  ;;  %vm405_vm1 = vcmask 31744  }
  0x35   : > { %1270 = vsyncadd (%p1724_p0), [#allocation4], 4294964992  ;;  %478 = vmatprep.mubr.f32.mxu0 %v1294_v0  ;;  %688 = vmatprep.mubr.f32.mxu1 %v1294_v0  ;;  %v396_v5 = vld [vmem:[%s1706_s2] sm:$0xff]  ;;  %vm392_vm2 = vcmask 138240   ;;  %vm394_vm3 = vcmask 277640   ;;  %s1296_s12 = smov 17  }
  0x36   : > { %s369_s28 = scalar_select %p368_p5, %s1382_s17, 1  ;;  %1192 = vset.pattern.permute.xlu0 %v1295_v1  ;;  %1193 = vset.pattern.permute.xlu1 %v1295_v1  ;;  %393 = vst.msk [vmem:[#allocation2] sm:$0xff] %vm392_vm2, %v1294_v0  ;;  %vm499_vm4 = vcmask 1047688   ;;  %v488_v18 = vld [vmem:[%s1709_s5] sm:$0xff]  ;;  %vm537_vm5 = vcmask 916480   ;;  %v1505_v32 = vld [vmem:[#allocation3] sm:$0xff] }
  0x37   : > { %400 = vperm.xlu0 %1192, %v397_v3   ;;  %395 = vst.msk [vmem:[#allocation2 + $0x10] sm:$0xff] %vm394_vm3, %v1294_v0  ;;  %s1297_s18 = smov 126   ;;  %s1300_s27 = smov 112   ;;  %v1503_v31 = vld [vmem:[#allocation3 + $0x8] sm:$0xff]  ;;  %vm526_vm6 = vcmask 1031168   ;;  %vm515_vm7 = vcmask 1039360  }
  0x38   : > { %s1095_s25 = sshll.u32 %s369_s28, 3  ;;  %s1298_s28 = smov 127   ;;  %v1507_v33 = vld [vmem:[#allocation3 + $0x38] sm:$0xff]  ;;  %v1510_v35 = vld [vmem:[#allocation3 + $0x10] sm:$0xff]  ;;  %vm548_vm8 = vcmask 908288   ;;  %v1516_v41 = vld [vmem:[#allocation3 + $0x28] sm:$0xff] }
  0x39   : > { %s372_s20 = scalar_lea.vmem %s1704_s0, %s1095_s25  ;;  %s1299_s25 = smov 111   ;;  %v1512_v36 = vld [vmem:[#allocation3 + $0x18] sm:$0xff]  ;;  %vm559_vm9 = vcmask 900096   ;;  %v1521_v45 = vld [vmem:[#allocation3 + $0x30] sm:$0xff]  ;;  %v1529_v51 = vld [vmem:[#allocation3 + $0x20] sm:$0xff]  ;;  %vm570_vm10 = vcmask 785408  }
  0x3a   : > { %v1451_v2 = vld [vmem:[%s372_s20] sm:$0xff]  ;;  %s1301_s11 = smov 96   ;;  %s1302_s20 = smov 110   ;;  %v1527_v50 = vld [vmem:[#allocation3 + $0x58] sm:$0xff]  ;;  %v1539_v63 = vld [vmem:[#allocation3 + $0x50] sm:$0xff]  ;;  %vm581_vm11 = vcmask 777216  }
  0x3b   : > { %v1458_v4 = vcombine.high %v1451_v2, %v1451_v2  ;;  %s1303_s21 = smov 95   ;;  %s1304_s26 = smov 94   ;;  %v1534_v59 = vld [vmem:[#allocation3 + $0x48] sm:$0xff]  ;;  %vm592_vm12 = vcmask 769024   ;;  %vm620_vm13 = vcmask 588800   ;;  %vm904_vm14 = vcmask 64512  }
  0x3c   : > { %s1096_s30 = sshll.u32 %s1382_s17, 7  ;;  %p1725_p9 = scmp.ne.s32.totalorder %s1718_s23, 0 }
  0x3d   : > { %1084 = vmatprep.subr.msk.mxu0 %vm409_vm0, %v1458_v4  ;;  %s1305_s17 = smov [#allocation6]  }
  0x3e   : > { %1085 = vmatpush1.msk.msra.mxu0 %vm409_vm0, %v1451_v2 }
  0x3f   : > { %1086 = vmatmul.mubr.msk.f32.vlgmr.msra.gmra.mrb[0].mxu0 %vm405_vm1, %v396_v5 }
  0x40   : > { %888 = vmatprep.mubr.f32.mxu0 %v1294_v0 }
  0xb6   : > { %v401_v6 = vpop.permute.xlu0 %400 }
 0x112   : > { %v480_v7 = vpop.f32.mrb[0].mxu0 }
 0x113   : > { %v481_v8 = vadd.f32 %v480_v7, %v401_v6  ;;  %v482_v9 = vpop.f32.mrb[1].mxu0 }
 0x114   : > { %v483_v10 = vadd.f32 %v482_v9, %v401_v6  ;;  %v1543_v6 = vld [vmem:[#allocation3 + $0x40] sm:$0xff] }
 0x115   : > { %v485_v11 = vmax.f32 %v481_v8, 0.0 }
 0x116   : > { %v486_v12 = vmax.f32 %v483_v10, 0.0 }
 0x117   : > { %491 = vrot.lane.b32.xlu0 %v485_v11, %s1296_s12 }
 0x118   : > { %493 = vrot.lane.b32.xlu1 %v486_v12, %s1296_s12 }
 0x189   : > { %v492_v13 = vpop.permute.xlu0 %491 }
 0x18a   : > { %500 = vst.msk [vmem:[#allocation2] sm:$0xff] %vm499_vm4, %v492_v13  ;;  %v494_v14 = vpop.permute.xlu1 %493 }
 0x18b   : > { %502 = vst.msk [vmem:[#allocation2 + $0x10] sm:$0xff] %vm392_vm2, %v494_v14  ;;  %v495_v17 = vsel %vm392_vm2, %v492_v13, %v494_v14 }
 0x18c   : > { %v598_v39 = vmul.f32 %v495_v17, %v1503_v31 }
 0x191   : > { %v503_v15 = vld [vmem:[#allocation2] sm:$0xff] }
 0x192   : > { %520 = vrot.lane.b32.xlu0 %v503_v15, %s1297_s18  ;;  %509 = vrot.lane.b32.xlu1 %v503_v15, %s1298_s28  ;;  %v505_v16 = vld [vmem:[#allocation2 + $0x10] sm:$0xff]  ;;  %v597_v40 = vmul.f32 %v503_v15, %v1505_v32 }
 0x196   : > { %542 = vrot.lane.b32.xlu0 %v503_v15, %s1299_s25  ;;  %531 = vrot.lane.b32.xlu1 %v503_v15, %s1300_s27 }
 0x19a   : > { %513 = vrot.lane.b32.xlu0 %v505_v16, %s1298_s28  ;;  %524 = vrot.lane.b32.xlu1 %v505_v16, %s1297_s18 }
 0x19e   : > { %564 = vrot.lane.b32.xlu0 %v503_v15, %s1301_s11  ;;  %535 = vrot.lane.b32.xlu1 %v505_v16, %s1300_s27 }
 0x1a2   : > { %546 = vrot.lane.b32.xlu1 %v505_v16, %s1299_s25  ;;  %522 = vrot.lane.b32.xlu0 %v495_v17, %s1297_s18 }
 0x1a6   : > { %557 = vrot.lane.b32.xlu1 %v505_v16, %s1302_s20  ;;  %533 = vrot.lane.b32.xlu0 %v495_v17, %s1300_s27 }
 0x1aa   : > { %544 = vrot.lane.b32.xlu0 %v495_v17, %s1299_s25  ;;  %511 = vrot.lane.b32.xlu1 %v495_v17, %s1298_s28 }
 0x1ae   : > { %555 = vrot.lane.b32.xlu0 %v495_v17, %s1302_s20  ;;  %553 = vrot.lane.b32.xlu1 %v503_v15, %s1302_s20 }
 0x1b2   : > { %566 = vrot.lane.b32.xlu0 %v495_v17, %s1301_s11  ;;  %568 = vrot.lane.b32.xlu1 %v505_v16, %s1301_s11 }
 0x1b6   : > { %577 = vrot.lane.b32.xlu0 %v495_v17, %s1303_s21  ;;  %579 = vrot.lane.b32.xlu1 %v505_v16, %s1303_s21 }
 0x1ba   : > { %588 = vrot.lane.b32.xlu0 %v495_v17, %s1304_s26  ;;  %575 = vrot.lane.b32.xlu1 %v503_v15, %s1303_s21  ;;  %v1552_v17 = vld [vmem:[#allocation3 + $0x78] sm:$0xff] }
 0x1be   : > { %586 = vrot.lane.b32.xlu0 %v503_v15, %s1304_s26  ;;  %590 = vrot.lane.b32.xlu1 %v505_v16, %s1304_s26  ;;  %v1549_v15 = vld [vmem:[#allocation3 + $0x68] sm:$0xff] }
 0x1c2   : > { %617 = vperm.xlu1 %1193, %v488_v18  }
 0x204   : > { %v521_v19 = vpop.permute.xlu0 %520  ;;  %v510_v20 = vpop.permute.xlu1 %509 }
 0x208   : > { %v543_v21 = vpop.permute.xlu0 %542  ;;  %v532_v22 = vpop.permute.xlu1 %531 }
 0x20c   : > { %v514_v23 = vpop.permute.xlu0 %513  ;;  %v525_v24 = vpop.permute.xlu1 %524 }
 0x210   : > { %v1501_v25 = vpop.permute.xlu0 %564  ;;  %v536_v26 = vpop.permute.xlu1 %535 }
 0x214   : > { %v547_v27 = vpop.permute.xlu1 %546  ;;  %v523_v28 = vpop.permute.xlu0 %522 }
 0x215   : > { %v528_v42 = vsel %vm526_vm6, %v523_v28, %v525_v24  ;;  %v527_v52 = vsel %vm526_vm6, %v521_v19, %v523_v28  ;;  %v1557_v24 = vld [vmem:[#allocation3 + $0x60] sm:$0xff] }
 0x216   : > { %v602_v53 = vmul.f32 %v528_v42, %v1516_v41  ;;  %v601_v5 = vmul.f32 %v527_v52, %v1529_v51 }
 0x218   : > { %v558_v29 = vpop.permute.xlu1 %557  ;;  %v534_v30 = vpop.permute.xlu0 %533 }
 0x219   : > { %v539_v34 = vsel %vm537_vm5, %v534_v30, %v536_v26  ;;  %v538_v46 = vsel %vm537_vm5, %v532_v22, %v534_v30 }
 0x21a   : > { %v604_v47 = vmul.f32 %v539_v34, %v1507_v33  ;;  %v603_v58 = vmul.f32 %v538_v46, %v1521_v45 }
 0x21c   : > { %v545_v37 = vpop.permute.xlu0 %544  ;;  %v512_v38 = vpop.permute.xlu1 %511  ;;  %v1101_v3 = vpack.c.bf16 %v604_v47, %v602_v53  ;;  %v1103_v12 = vpack.c.bf16 %v603_v58, %v601_v5  ;;  %v698_v5 = vld [vmem:[%s1711_s7] sm:$0xff] }
 0x21d   : > { %v516_v43 = vsel %vm515_vm7, %v510_v20, %v512_v38  ;;  %v517_v44 = vsel %vm515_vm7, %v512_v38, %v514_v23  ;;  %v550_v60 = vsel %vm548_vm8, %v545_v37, %v547_v27  ;;  %v549_v7 = vsel %vm548_vm8, %v543_v21, %v545_v37  ;;  %v1561_v27 = vld [vmem:[#allocation3 + $0x70] sm:$0xff] }
 0x21e   : > { %v599_v48 = vmul.f32 %v516_v43, %v1510_v35  ;;  %v600_v49 = vmul.f32 %v517_v44, %v1512_v36  ;;  %v606_v8 = vmul.f32 %v550_v60, %v1534_v59  ;;  %v605_v14 = vmul.f32 %v549_v7, %v1543_v6 }
 0x220   : > { %v556_v54 = vpop.permute.xlu0 %555  ;;  %v554_v55 = vpop.permute.xlu1 %553  ;;  %v1097_v56 = vpack.c.bf16 %v600_v49, %v598_v39  ;;  %v1099_v57 = vpack.c.bf16 %v599_v48, %v597_v40  ;;  %v1566_v39 = vld [vmem:[#allocation3 + $0x88] sm:$0xff] }
 0x221   : > { %v561_v61 = vsel %vm559_vm9, %v556_v54, %v558_v29  ;;  %v560_v1 = vsel %vm559_vm9, %v554_v55, %v556_v54  ;;  %v487_v49 = vld [vmem:[%s1708_s4] sm:$0xff] }
 0x222   : > { %v608_v62 = vmul.f32 %v561_v61, %v1527_v50  ;;  %1098 = vmatprep.subr.bf16.mxu1 %v1097_v56  ;;  %v607_v11 = vmul.f32 %v560_v1, %v1539_v63 }
 0x223   : > { %1100 = vmatpush1.bf16.msra.mxu1 %v1099_v57 }
 0x224   : > { %v567_v9 = vpop.permute.xlu0 %566  ;;  %v569_v10 = vpop.permute.xlu1 %568  ;;  %1102 = vmatprep.subr.bf16.mxu1 %v1101_v3  ;;  %v1105_v13 = vpack.c.bf16 %v608_v62, %v606_v8  ;;  %v1107_v21 = vpack.c.bf16 %v607_v11, %v605_v14  ;;  %v898_v3 = vld [vmem:[%s1713_s9] sm:$0xf] }
 0x225   : > { %v572_v16 = vsel %vm570_vm10, %v567_v9, %v569_v10  ;;  %v571_v26 = vsel %vm570_vm10, %v1501_v25, %v567_v9  ;;  %v1568_v25 = vld [vmem:[#allocation3 + $0x80] sm:$0xff] }
 0x226   : > { %v610_v22 = vmul.f32 %v572_v16, %v1549_v15  ;;  %v609_v37 = vmul.f32 %v571_v26, %v1557_v24 }
 0x227   : > { %1104 = vmatpush1.bf16.msra.mxu1 %v1103_v12 }
 0x228   : > { %v578_v18 = vpop.permute.xlu0 %577  ;;  %v580_v19 = vpop.permute.xlu1 %579  ;;  %1106 = vmatprep.subr.bf16.mxu1 %v1105_v13 }
 0x229   : > { %v583_v20 = vsel %vm581_vm11, %v578_v18, %v580_v19 }
 0x22a   : > { %v612_v23 = vmul.f32 %v583_v20, %v1552_v17 }
 0x22b   : > { %1108 = vmatpush1.bf16.msra.mxu1 %v1107_v21 }
 0x22c   : > { %v589_v28 = vpop.permute.xlu0 %588  ;;  %v576_v29 = vpop.permute.xlu1 %575  ;;  %v1109_v30 = vpack.c.bf16 %v612_v23, %v610_v22 }
 0x22d   : > { %v582_v34 = vsel %vm581_vm11, %v576_v29, %v578_v18 }
 0x22e   : > { %v611_v38 = vmul.f32 %v582_v34, %v1561_v27  ;;  %1110 = vmatprep.subr.bf16.mxu1 %v1109_v30 }
 0x230   : > { %v587_v40 = vpop.permute.xlu0 %586  ;;  %v591_v42 = vpop.permute.xlu1 %590  ;;  %v1111_v43 = vpack.c.bf16 %v611_v38, %v609_v37 }
 0x231   : > { %v593_v44 = vsel %vm592_vm12, %v587_v40, %v589_v28  ;;  %v594_v46 = vsel %vm592_vm12, %v589_v28, %v591_v42 }
 0x232   : > { %v614_v47 = vmul.f32 %v594_v46, %v1566_v39  ;;  %1112 = vmatpush1.bf16.msra.mxu1 %v1111_v43  ;;  %v613_v48 = vmul.f32 %v593_v44, %v1568_v25 }
 0x234   : > { %640 = vmatprep.subr.mxu1 %v614_v47 }
 0x236   : > { %641 = vmatpush1.msra.mxu1 %v613_v48 }
 0x237   : > { %1087 = vmatmul.mubr.msk.f32.vlgmr.msra.gmra.mrb[0].mxu1 %vm620_vm13, %v487_v49 }
 0x238   : > { %972 = vmatprep.mubr.f32.mxu1 %v1294_v0 }
 0x241   : > { %v618_v52 = vpop.permute.xlu1 %617 }
 0x30a   : > { %v690_v53 = vpop.f32.mrb[0].mxu1 }
 0x30b   : > { %v691_v54 = vadd.f32 %v690_v53, %v618_v52  ;;  %v692_v55 = vpop.f32.mrb[1].mxu1 }
 0x30c   : > { %v693_v56 = vadd.f32 %v692_v55, %v618_v52 }
 0x30d   : > { %v695_v57 = vmax.f32 %v691_v54, 0.0 }
 0x30e   : > { %v696_v58 = vmax.f32 %v693_v56, 0.0 }
 0x30f   : > { %701 = vrot.lane.b32.xlu0 %v695_v57, %s1296_s12 }
 0x310   : > { %703 = vrot.lane.b32.xlu1 %v696_v58, %s1296_s12 }
 0x381   : > { %v702_v60 = vpop.permute.xlu0 %701 }
 0x382   : > { %709 = vst.msk [vmem:[#allocation2] sm:$0xff] %vm499_vm4, %v702_v60  ;;  %v704_v61 = vpop.permute.xlu1 %703 }
 0x383   : > { %v705_v62 = vsel %vm392_vm2, %v702_v60, %v704_v61  ;;  %711 = vst.msk [vmem:[#allocation2 + $0x10] sm:$0xff] %vm392_vm2, %v704_v61 }
 0x384   : > { %v799_v26 = vmul.f32 %v705_v62, %v1503_v31 }
 0x389   : > { %v712_v0 = vld [vmem:[#allocation2] sm:$0xff] }
 0x38a   : > { %728 = vrot.lane.b32.xlu1 %v712_v0, %s1297_s18  ;;  %718 = vrot.lane.b32.xlu0 %v712_v0, %s1298_s28  ;;  %v714_v1 = vld [vmem:[#allocation2 + $0x10] sm:$0xff]  ;;  %v798_v29 = vmul.f32 %v712_v0, %v1505_v32 }
 0x38e   : > { %748 = vrot.lane.b32.xlu1 %v712_v0, %s1299_s25  ;;  %738 = vrot.lane.b32.xlu0 %v712_v0, %s1300_s27 }
 0x392   : > { %722 = vrot.lane.b32.xlu1 %v714_v1, %s1298_s28  ;;  %732 = vrot.lane.b32.xlu0 %v714_v1, %s1297_s18 }
 0x396   : > { %768 = vrot.lane.b32.xlu1 %v712_v0, %s1301_s11  ;;  %742 = vrot.lane.b32.xlu0 %v714_v1, %s1300_s27 }
 0x39a   : > { %752 = vrot.lane.b32.xlu0 %v714_v1, %s1299_s25  ;;  %730 = vrot.lane.b32.xlu1 %v705_v62, %s1297_s18 }
 0x39e   : > { %762 = vrot.lane.b32.xlu0 %v714_v1, %s1302_s20  ;;  %740 = vrot.lane.b32.xlu1 %v705_v62, %s1300_s27  ;;  %s1662_s27 = scalar_lea.hbm %s1714_s10, %s1096_s30 }
 0x3a2   : > { %750 = vrot.lane.b32.xlu1 %v705_v62, %s1299_s25  ;;  %720 = vrot.lane.b32.xlu0 %v705_v62, %s1298_s28 }
 0x3a6   : > { %760 = vrot.lane.b32.xlu1 %v705_v62, %s1302_s20  ;;  %758 = vrot.lane.b32.xlu0 %v712_v0, %s1302_s20 }
 0x3aa   : > { %770 = vrot.lane.b32.xlu1 %v705_v62, %s1301_s11  ;;  %772 = vrot.lane.b32.xlu0 %v714_v1, %s1301_s11 }
 0x3ae   : > { %780 = vrot.lane.b32.xlu1 %v705_v62, %s1303_s21  ;;  %782 = vrot.lane.b32.xlu0 %v714_v1, %s1303_s21 }
 0x3b2   : > { %790 = vrot.lane.b32.xlu1 %v705_v62, %s1304_s26  ;;  %778 = vrot.lane.b32.xlu0 %v712_v0, %s1303_s21  ;;  %s1227_s21 = sshll.u32 %s1305_s17, 4  ;;  %s1228_s21 = int_to_ptr.vmem [resolvable:$false] %s1227_s21 }
 0x3b6   : > { %788 = vrot.lane.b32.xlu1 %v712_v0, %s1304_s26  ;;  %792 = vrot.lane.b32.xlu0 %v714_v1, %s1304_s26  ;;  %s365_s26 = sand.u32 1, %s1281_s14  }
 0x3b7   : > { %s1081_s29 = sshll.u32 %s365_s26, 3  ;;  %s990_s11 = scalar_lea.sflag [#allocation5], %s365_s26 }
 0x3b8   : > { %s367_s12 = scalar_lea.vmem [#allocation6], %s1081_s29  ;;  %s1229_s29 = scalar_lea.vmem %s1228_s21, 256 }
 0x3b9   : > { %s1004_s18 = sshll.u32 %s367_s12, 4  ;;  %s1664_s18 = int_to_ptr.vmem [resolvable:$true] %s1004_s18 }
 0x3ba   : > { %901 = vperm.xlu1 %1193, %v898_v3   ;;  %818 = vperm.xlu0 %1192, %v698_v5   ;;  %s1223_s20 = scalar_lea.vmem %s1664_s18, 128  ;;  %p1230_p2 = scmp.lt.s32.totalorder %s1664_s18, %s1228_s21 }
 0x3bb   : > { %p1224_p6 = scmp.ne.s32.totalorder %s1664_s18, %s1223_s20  ;;  %p1231_p3 = scmp.lt.s32.totalorder %s1229_s29, %s1223_s20 }
 0x3bd   : > { %p1225_p10 = pnand %p1224_p6, %p1725_p9  ;;  %p1232_p4 = por %p1231_p3, %p1230_p2 }
 0x3bf   : > { %p1226_p12 = pneg %p1225_p10 }
 0x3c1   : > { %p1233_p7 = pnand %p1232_p4, %p1226_p12 }
 0x3fc   : > { %v729_v7 = vpop.permute.xlu1 %728  ;;  %v719_v8 = vpop.permute.xlu0 %718 }
 0x400   : > { %v749_v9 = vpop.permute.xlu1 %748  ;;  %v739_v10 = vpop.permute.xlu0 %738 }
 0x404   : > { %v723_v11 = vpop.permute.xlu1 %722  ;;  %v733_v12 = vpop.permute.xlu0 %732 }
 0x408   : > { %v769_v13 = vpop.permute.xlu1 %768  ;;  %v743_v14 = vpop.permute.xlu0 %742 }
 0x40c   : > { %v753_v16 = vpop.permute.xlu0 %752  ;;  %v731_v18 = vpop.permute.xlu1 %730 }
 0x40d   : > { %v735_v28 = vsel %vm526_vm6, %v731_v18, %v733_v12  ;;  %v734_v43 = vsel %vm526_vm6, %v729_v7, %v731_v18 }
 0x40e   : > { %v803_v31 = vmul.f32 %v735_v28, %v1516_v41  ;;  %v802_v53 = vmul.f32 %v734_v43, %v1529_v51 }
 0x410   : > { %v763_v19 = vpop.permute.xlu0 %762  ;;  %v741_v20 = vpop.permute.xlu1 %740 }
 0x411   : > { %v745_v21 = vsel %vm537_vm5, %v741_v20, %v743_v14  ;;  %v744_v37 = vsel %vm537_vm5, %v739_v10, %v741_v20 }
 0x412   : > { %v805_v38 = vmul.f32 %v745_v21, %v1507_v33  ;;  %v804_v48 = vmul.f32 %v744_v37, %v1521_v45 }
 0x414   : > { %v751_v22 = vpop.permute.xlu1 %750  ;;  %v721_v23 = vpop.permute.xlu0 %720  ;;  %v1119_v45 = vpack.c.bf16 %v804_v48, %v802_v53 }
 0x415   : > { %v724_v30 = vsel %vm515_vm7, %v719_v8, %v721_v23  ;;  %v725_v34 = vsel %vm515_vm7, %v721_v23, %v723_v11  ;;  %v755_v49 = vsel %vm548_vm8, %v751_v22, %v753_v16  ;;  %v754_v41 = vsel %vm548_vm8, %v749_v9, %v751_v22 }
 0x416   : > { %v800_v40 = vmul.f32 %v724_v30, %v1510_v35  ;;  %v801_v42 = vmul.f32 %v725_v34, %v1512_v36  ;;  %v1117_v36 = vpack.c.bf16 %v805_v38, %v803_v31  ;;  %v807_v54 = vmul.f32 %v755_v49, %v1534_v59 }
 0x418   : > { %v1115_v44 = vpack.c.bf16 %v800_v40, %v798_v29  ;;  %v761_v46 = vpop.permute.xlu1 %760  ;;  %v759_v47 = vpop.permute.xlu0 %758  ;;  %v1113_v32 = vpack.c.bf16 %v801_v42, %v799_v26 }
 0x419   : > { %v765_v52 = vsel %vm559_vm9, %v761_v46, %v763_v19  ;;  %v764_v35 = vsel %vm559_vm9, %v759_v47, %v761_v46 }
 0x41a   : > { %v809_v33 = vmul.f32 %v765_v52, %v1527_v50  ;;  %1114 = vmatprep.subr.bf16.mxu0 %v1113_v32  ;;  %v808_v57 = vmul.f32 %v764_v35, %v1539_v63  ;;  %v806_v50 = vmul.f32 %v754_v41, %v1543_v6 }
 0x41b   : > { %1116 = vmatpush1.bf16.msra.mxu0 %v1115_v44 }
 0x41c   : > { %v771_v55 = vpop.permute.xlu1 %770  ;;  %v773_v56 = vpop.permute.xlu0 %772  ;;  %1118 = vmatprep.subr.bf16.mxu0 %v1117_v36  ;;  %v1121_v58 = vpack.c.bf16 %v809_v33, %v807_v54  ;;  %v1123_v51 = vpack.c.bf16 %v808_v57, %v806_v50 }
 0x41d   : > { %v775_v60 = vsel %vm570_vm10, %v771_v55, %v773_v56  ;;  %v774_v3 = vsel %vm570_vm10, %v769_v13, %v771_v55 }
 0x41e   : > { %v811_v59 = vmul.f32 %v775_v60, %v1549_v15  ;;  %v810_v8 = vmul.f32 %v774_v3, %v1557_v24  ;;  %v697_v24 = vld [vmem:[%s1710_s6] sm:$0xff] }
 0x41f   : > { %1120 = vmatpush1.bf16.msra.mxu0 %v1119_v45 }
 0x420   : > { %v781_v61 = vpop.permute.xlu1 %780  ;;  %v783_v62 = vpop.permute.xlu0 %782  ;;  %1122 = vmatprep.subr.bf16.mxu0 %v1121_v58 }
 0x421   : > { %v785_v0 = vsel %vm581_vm11, %v781_v61, %v783_v62 }
 0x422   : > { %v813_v1 = vmul.f32 %v785_v0, %v1552_v17 }
 0x423   : > { %1124 = vmatpush1.bf16.msra.mxu0 %v1123_v51 }
 0x424   : > { %v791_v63 = vpop.permute.xlu1 %790  ;;  %v779_v5 = vpop.permute.xlu0 %778  ;;  %v1125_v7 = vpack.c.bf16 %v813_v1, %v811_v59 }
 0x425   : > { %v784_v6 = vsel %vm581_vm11, %v779_v5, %v781_v61 }
 0x426   : > { %v812_v9 = vmul.f32 %v784_v6, %v1561_v27  ;;  %1126 = vmatprep.subr.bf16.mxu0 %v1125_v7 }
 0x428   : > { %v1127_v10 = vpack.c.bf16 %v812_v9, %v810_v8  ;;  %v789_v11 = vpop.permute.xlu1 %788  ;;  %v793_v12 = vpop.permute.xlu0 %792 }
 0x429   : > { %v794_v15 = vsel %vm592_vm12, %v789_v11, %v791_v63  ;;  %v795_v17 = vsel %vm592_vm12, %v791_v63, %v793_v12 }
 0x42a   : > { %v815_v13 = vmul.f32 %v795_v17, %v1566_v39  ;;  %1128 = vmatpush1.bf16.msra.mxu0 %v1127_v10  ;;  %v814_v14 = vmul.f32 %v794_v15, %v1568_v25  ;;  %v897_v39 = vld [vmem:[%s1712_s8] sm:$0xf] }
 0x42c   : > { %840 = vmatprep.subr.mxu0 %v815_v13 }
 0x42e   : > { %841 = vmatpush1.msra.mxu0 %v814_v14 }
 0x42f   : > { %1088 = vmatmul.mubr.msk.f32.vlgmr.msra.gmra.mrb[2].mxu0 %vm620_vm13, %v697_v24 }
 0x439   : > { %v819_v27 = vpop.permute.xlu0 %818  ;;  %v902_v25 = vpop.permute.xlu1 %901 }
 0x502   : > { %v890_v16 = vpop.f32.mrb[2].mxu0 }
 0x503   : > { %v891_v18 = vadd.f32 %v890_v16, %v819_v27  ;;  %v892_v19 = vpop.f32.mrb[3].mxu0 }
 0x504   : > { %v893_v20 = vadd.f32 %v892_v19, %v819_v27 }
 0x505   : > { %v895_v22 = vmax.f32 %v891_v18, 0.0 }
 0x506   : > { %v896_v21 = vmax.f32 %v893_v20, 0.0 }
 0x508   : > { %908 = vmatprep.subr.mxu1 %v896_v21 }
 0x509   : > { %909 = vmatpush1.msra.mxu1 %v895_v22 }
 0x50a   : > { %1089 = vmatmul.mubr.msk.f32.vlgmr.msra.gmra.mrb[2].mxu1 %vm904_vm14, %v897_v39 }
 0x5dd   : > { %v974_v23 = vpop.f32.mrb[2].mxu1 }
 0x5de   : > { %v975_v26 = vadd.f32 %v974_v23, %v902_v25  ;;  %v976_v28 = vpop.f32.mrb[3].mxu1 }
 0x5df   : > { %v977_v29 = vadd.f32 %v976_v28, %v902_v25 }
 0x5e0   : > { %v979_v30 = vmax.f32 %v975_v26, 0.0 }
 0x5e1   : > { %v980_v34 = vmax.f32 %v977_v29, 0.0 }
 0x5e2   : > { %v982_v37 = vadd.f32 %v979_v30, %v1451_v2 }
 0x5e3   : > { %v983_v38 = vadd.f32 %v980_v34, %v1458_v4 }
 0x5e5   : > { %v986_v40 = vcombine.low %v982_v37, %v983_v38 }
 0x5e7   : > { %988 = vst [vmem:[%s367_s12] sm:$0xff] %v986_v40 }
 0x5e8   : > { %1236 = shalt.err (!%p1233_p7)
}
 0x5e9   : > { %s1237_s26 = scalar_lea.hbm %s1662_s27, 128  ;;  %s1241_s28 = scalar_lea.hbm %s1714_s10, 256 }
 0x5ea   : > { %p1238_p8 = scmp.ne.s32.totalorder %s1662_s27, %s1237_s26  ;;  %p1242_p1 = scmp.lt.u32.totalorder %s1662_s27, %s1714_s10 }
 0x5eb   : > { %p1243_p0 = scmp.lt.u32.totalorder %s1241_s28, %s1237_s26  ;;  %p1245_p6 = scmp.lt.u32.totalorder %s1237_s26, %s1662_s27 }
 0x5ec   : > { %p1239_p11 = pnand %p1238_p8, %p1725_p9 }
 0x5ed   : > { %p1244_p5 = por %p1243_p0, %p1242_p1 }
 0x5ee   : > { %p1240_p13 = pneg %p1239_p11 }
 0x5ef   : > { %p1246_p10 = por %p1245_p6, %p1244_p5 }
 0x5f1   : > { %p1247_p12 = pnand %p1246_p10, %p1240_p13 }
 0x5f3   : > { %1250 = shalt.err (!%p1247_p12)
}
 0x5f4   : > { %1133 = dma.vmem_to_hbm [thread:$0]  (%p1725_p9), %s1664_s18, 128, %s1662_s27, %s990_s11  }
 0x5f5 PF: > { %p1145_p2 = scmp.ge.s32.totalorder %s1289_s16, 2  ;;  %s1016_s20 = sand.u32 1, %s1277_s13  }
 0x5f6   : > { %p1726_p3 = scmp.ne.s32.totalorder %s1719_s24, 0  ;;  %s1017_s21 = scalar_lea.sflag [#allocation5], %s1016_s20 }
 0x5f8   : > { %p1140_p4 = pnand %p1145_p2, %p1726_p3 }
 0x5fa   : > { %1272 = dma.done.wait (!%p1140_p4), %s1017_s21, 128  }
 0x5fb   : > { %1274 = vsyncadd (!%p1140_p4), %s1017_s21, 4294967168  ;;  %p21_p7 = scmp.ge.s32.totalorder %s1386_s19, 4   ;;  %s1727_s13 = smov %s1281_s14 }
 0x5fc   : > { %s1728_s14 = smov %s1285_s15  ;;  %s1729_s15 = smov %s1397_s22 }
 0x5fd   : > { %s1730_s16 = smov %s1386_s19  ;;  %23 = sbr.rel (!%p21_p7) target bundleno = 4 (0x4), region = 100 }
 0x604   :  { %1022 = vsyncpa [#allocation4], 1 }
 0x605   :  { %1024 = vsyncpa [#allocation4 + $0x1], 1 }
 0x606   :  { %1025 = vsyncpa [#allocation5], 1 }
 0x607   :  { %1027 = vsyncpa [#allocation5 + $0x1], 1 }

</bundles_post_ra>
